<compile_context>
chip_gen: v5e
topology: v5e:2x2
jax: 0.10.0
libtpu: 0.0.40
codegen_flags: <defaults>
</compile_context>

<pallas_src>
import math

import jax
import jax.numpy as jnp
from jax.experimental import pallas as pl
from jax.experimental.pallas import tpu as pltpu

_TARGET_BLOCK_BYTES = 4 * 1024 * 1024   # ~4 MiB per block (x4 pipeline bufs = 16 MiB)
_VMEM_LIMIT_BYTES = 48 * 1024 * 1024    # > default scoped limit, < v7x physical 64 MiB


def _copy_kernel(x_ref, o_ref):
    # Flatten is a pure memory-layout op: identity copy of the current tile.
    o_ref[...] = x_ref[...]


def _flatten_out_shape(shape, dim):
    ndim = len(shape)
    d = dim % ndim  # torch start_dim semantics for negative dims
    return shape[:d] + (int(math.prod(shape[d:])),)


def flatten_zero_copy(feat: jax.Array, dim: int = -1) -> jax.Array:
    """Production path: metadata-only reshape (what torch.flatten really is)."""
    if feat.ndim == 0:
        return feat
    return feat.reshape(_flatten_out_shape(feat.shape, dim))


def _pick_lanes(total: int) -> int:
    """Largest lane-dense width (multiple of 128, capped at 2048) dividing total."""
    for cand in (2048, 1024, 512, 256, 128):
        if total % cand == 0:
            return cand
    return 0


def _pick_block_rows(rows: int, row_bytes: int, sublane: int) -> int:
    """Largest divisor of `rows` within the VMEM block budget, preferring
    sublane-aligned divisors (dtype-aware packing)."""
    budget_rows = max(1, _TARGET_BLOCK_BYTES // row_bytes)
    limit = min(rows, budget_rows)
    best_aligned, best_any = 0, 1
    for cand in range(1, limit + 1):
        if rows % cand == 0:
            best_any = cand
            if cand % sublane == 0:
                best_aligned = cand
    return best_aligned if best_aligned else best_any


def flatten_pallas(feat: jax.Array, dim: int = -1) -> jax.Array:
    """Pallas copy-kernel equivalent of torch.flatten(feat, start_dim=dim)."""
    if feat.ndim == 0:
        return feat
    shape = feat.shape
    out_shape = _flatten_out_shape(shape, dim)

    total = int(math.prod(shape))
    lanes = _pick_lanes(total)
    if total == 0 or lanes == 0:
        # Not lane-alignable (or empty): degrade gracefully to the zero-copy
        # reshape rather than an unbounded whole-array block.
        return feat.reshape(out_shape)

    itemsize = jnp.dtype(feat.dtype).itemsize
    sublane = max(8, 32 // itemsize)          # 8 f32 / 16 bf16 / 32 int8-fp8
    rows = total // lanes
    block_rows = _pick_block_rows(rows, lanes * itemsize, sublane)
    grid = (rows // block_rows,)

    # Flatten is order-preserving, so any contiguous re-view of the element
    # stream is legal; use a lane-dense 2D slab decoupled from logical dims.
    x2d = feat.reshape(rows, lanes)

    out2d = pl.pallas_call(
        _copy_kernel,
        out_shape=jax.ShapeDtypeStruct((rows, lanes), feat.dtype),
        grid_spec=pltpu.PrefetchScalarGridSpec(
            num_scalar_prefetch=0,
            grid=grid,
            in_specs=[pl.BlockSpec((block_rows, lanes), lambda i: (i, 0))],
            out_specs=pl.BlockSpec((block_rows, lanes), lambda i: (i, 0)),
        ),
        compiler_params=pltpu.CompilerParams(
            dimension_semantics=("parallel",),
            vmem_limit_bytes=_VMEM_LIMIT_BYTES,
        ),
    )(x2d)

    return out2d.reshape(out_shape)


class Flatten:
    """Mirror of the PyTorch module (no parameters).

    use_pallas=True  -> explicit Pallas copy kernel (optimized tiling above).
    use_pallas=False -> zero-copy reshape (recommended production path).
    """

    def __init__(self, dim: int = -1, use_pallas: bool = True):
        self.dim = dim
        self.use_pallas = use_pallas

    def __call__(self, feat: jax.Array) -> jax.Array:
        if self.use_pallas:
            return flatten_pallas(feat, self.dim)
        return flatten_zero_copy(feat, self.dim)


if __name__ == "__main__":
    key = jax.random.PRNGKey(0)
    # NCHW input consistent with a conv feature map.
    x = jax.random.normal(key, (2, 4, 16, 16), dtype=jnp.float32)

    # Default module config: dim=-1 (flattening the last dim -> same shape).
    y_default = jax.block_until_ready(Flatten()(x))
    assert y_default.shape == x.shape
    assert jnp.array_equal(y_default, x)

    # Common usage: flatten from dim=1 -> (N, C*H*W).
    ref1 = x.reshape(x.shape[0], -1)
    y1 = jax.block_until_ready(Flatten(dim=1)(x))
    assert y1.shape == (2, 4 * 16 * 16)
    assert jnp.array_equal(y1, ref1)

    # dim=0: full flatten.
    y0 = jax.block_until_ready(Flatten(dim=0)(x))
    assert y0.shape == (2048,)
    assert jnp.array_equal(y0, x.reshape(-1))

    # bf16 path (exercises dtype-aware sublane packing).
    xb = x.astype(jnp.bfloat16)
    yb = jax.block_until_ready(Flatten(dim=1)(xb))
    assert jnp.array_equal(yb, xb.reshape(2, -1))

    # Odd element count -> graceful zero-copy fallback (no giant block / OOM).
    x_odd = jax.random.normal(jax.random.PRNGKey(1), (2, 3, 5), dtype=jnp.float32)
    y_odd = jax.block_until_ready(Flatten(dim=1)(x_odd))
    assert y_odd.shape == (2, 15)
    assert jnp.array_equal(y_odd, x_odd.reshape(2, 15))

    # Zero-copy production path (per perf review: flatten is a pure reshape).
    yz = jax.block_until_ready(Flatten(dim=1, use_pallas=False)(x))
    assert jnp.array_equal(yz, ref1)

    print("KERNEL_OK")
</pallas_src>

<mosaic_0001>
module attributes {stable_mosaic.version = 11 : i64} {
  func.func @_copy_kernel(%arg0: i32, %arg1: memref<1x2048xf32, #tpu.memory_space<vmem>>, %arg2: memref<1x2048xf32, #tpu.memory_space<vmem>>) attributes {dimension_semantics = [#tpu.dimension_semantics<parallel>], iteration_bounds = array<i64: 1>, scalar_prefetch = 0 : i64, scratch_operands = 0 : i64, tpu.core_type = #tpu.core_type<tc>, window_params = [{transform_indices = @transform_0, window_bounds = array<i64: 1, 2048>}, {transform_indices = @transform_1, window_bounds = array<i64: 1, 2048>}]} {
    %c0 = arith.constant 0 : index
    %c0_0 = arith.constant 0 : index
    %0 = vector.load %arg1[%c0, %c0_0] : memref<1x2048xf32, #tpu.memory_space<vmem>>, vector<1x2048xf32>
    %c0_1 = arith.constant 0 : index
    %c0_2 = arith.constant 0 : index
    %1 = vector.load %arg2[%c0_1, %c0_2] : memref<1x2048xf32, #tpu.memory_space<vmem>>, vector<1x2048xf32>
    tpu.vector_store %arg2[%c0_1, %c0_2], %0 {strides = array<i32>} : memref<1x2048xf32, #tpu.memory_space<vmem>>, vector<1x2048xf32>,
    return
  }
  func.func @transform_0(%arg0: i32) -> (i32, i32) {
    %c0_i32 = arith.constant 0 : i32
    %c0_i32_0 = arith.constant 0 : i32
    return %arg0, %c0_i32 : i32, i32
  }
  func.func @transform_1(%arg0: i32) -> (i32, i32) {
    %c0_i32 = arith.constant 0 : i32
    %c0_i32_0 = arith.constant 0 : i32
    return %arg0, %c0_i32 : i32, i32
  }
}

</mosaic_0001>

<bundles_post_ra>
// kernel: tpu_custom_call.1
= control target key start
LH: loop header
LB: loop body
LE: loop exit
PB: predicated region body
PF: predicated region fallthrough
CT: control target
= control target key end

     0   :  { %6 = vsyncpa [#allocation3], 0  ;;  %s116_s0 = inlined_call_operand.hbm [shape: f32[1,2048], index: 0, kind: input, shape index: {}]   ;;  %s117_s1 = inlined_call_operand.hbm [shape: f32[1,2048], index: 1, kind: output, shape index: {}]  }
   0x1   :  { %7 = vsyncpa [#allocation4], 0  ;;  %s13_s8 = sshll.u32 %s116_s0, 4  ;;  %s98_s9 = smov [#allocation2]   ;;  %s14_s8 = int_to_ptr.hbm [resolvable:$true] %s13_s8 }
   0x2   :  { %s15_s10 = sshll.u32 %s98_s9, 4  ;;  %s16_s10 = int_to_ptr.vmem [resolvable:$true] %s15_s10 }
   0x3   :  { %18 = dma.hbm_to_vmem [thread:$0]  %s14_s8, 256, %s16_s10, [#allocation3]  }
   0x4   :  { %94 = dma.done.wait [#allocation3], 256  }
   0x5   :  { %95 = vsyncadd [#allocation3], 4294967040  ;;  %s99_s11 = smov [#allocation5]   ;;  %s34_s15 = sshll.u32 %s117_s1, 4  ;;  %v23_v0 = vld [vmem:[#allocation2] sm:$0xff]  ;;  %v24_v1 = vld [vmem:[#allocation2 + $0x8] sm:$0xff]  ;;  %s35_s15 = int_to_ptr.hbm [resolvable:$true] %s34_s15 }
   0x6   :  { %s32_s12 = sshll.u32 %s99_s11, 4  ;;  %25 = vst [vmem:[#allocation5] sm:$0xff] %v23_v0  ;;  %s33_s12 = int_to_ptr.vmem [resolvable:$true] %s32_s12 }
   0x7   :  { %26 = vst [vmem:[#allocation5 + $0x8] sm:$0xff] %v24_v1 }
   0x8   :  { %37 = dma.vmem_to_hbm [thread:$0]  %s33_s12, 256, %s35_s15, [#allocation4]  }
   0x9   :  { %96 = dma.done.wait [#allocation4], 256  }
   0xa   :  { %97 = vsyncadd [#allocation4], 4294967040 }
   0xb   :  { %42 = vsyncpa [#allocation3], 1 }
   0xc   :  { %43 = vsyncpa [#allocation4], 1 }

</bundles_post_ra>
